<compile_context>
chip_gen: v7x
topology: tpu7x:2x2x1
jax: 0.10.0
libtpu: 0.0.40
codegen_flags: <defaults>
</compile_context>

<pallas_src>
import functools

import jax
import jax.numpy as jnp
from jax import lax
from jax.experimental import pallas as pl
from jax.experimental.pallas import tpu as pltpu

MAX_TILE_R = 1024  # up to (1024, 128) f32 blocks = 512 KiB per input block


def _noise_dot_kernel(noise_ref, p_ref, out_ref, *, sub_rows):
    """One grid step: partial sum of noise * param over a (tile_r, 128) block.

    Accumulates into an (8, 128) vreg-shaped value (elementwise VPU adds only;
    no cross-lane reduce, no scalar round-trip in the hot loop) and writes it
    to the lane-dense per-block output slot.
    """
    tile_r = p_ref.shape[0]
    n_sub = tile_r // sub_rows

    def body(s, acc):
        start = s * sub_rows
        prod = (noise_ref[pl.ds(start, sub_rows), :]
                * p_ref[pl.ds(start, sub_rows), :])
        # (sub_rows, 128) -> (sub_rows // 8, 8, 128) is layout-preserving;
        # the axis-0 sum is plain vreg adds.
        return acc + jnp.sum(prod.reshape(sub_rows // 8, 8, 128), axis=0)

    acc = lax.fori_loop(0, n_sub, body,
                        jnp.zeros((8, 128), jnp.float32), unroll=True)
    out_ref[0] = acc


def noise_loss(params, *, seed, scale, total):
    """Pallas implementation of NoiseLoss.forward(params)."""
    assert scale, (
        "scale is not provided, which should follow "
        "'2 * SGHMAC_alpha * learning_rate * identity_tensor'"
    )

    # --- glue: flatten + concat + pad + reshape to (rows, 128) f32 ---
    # (For very large models, feed params via pl.ANY + prefetched offsets to
    #  avoid this concat copy; kept simple here for small demo shapes.)
    flat = jnp.concatenate([jnp.ravel(p).astype(jnp.float32) for p in params])
    n = flat.shape[0]

    rows = -(-n // 128)                 # lane dim = 128
    rows = ((rows + 7) // 8) * 8        # sublane multiple of 8
    if rows > MAX_TILE_R:
        tile_r = MAX_TILE_R
        rows = ((rows + tile_r - 1) // tile_r) * tile_r
    else:
        tile_r = rows
    n_pad = rows * 128
    flat = jnp.pad(flat, (0, n_pad - n))
    mat = flat.reshape(rows, 128)
    grid = rows // tile_r

    # Largest sub-slab row count (multiple of 8) that divides the block.
    sub_rows = next(c for c in (256, 128, 64, 32, 16, 8) if tile_r % c == 0)

    # Single-key noise: tiling-invariant and reproducible. Zero-padded param
    # entries contribute nothing regardless of the noise drawn there.
    noise = jax.random.normal(jax.random.PRNGKey(seed), (rows, 128), jnp.float32)

    kernel = functools.partial(_noise_dot_kernel, sub_rows=sub_rows)

    partials = pl.pallas_call(
        kernel,
        out_shape=jax.ShapeDtypeStruct((grid, 8, 128), jnp.float32),
        grid=(grid,),
        in_specs=[
            pl.BlockSpec((tile_r, 128), lambda i: (i, 0)),
            pl.BlockSpec((tile_r, 128), lambda i: (i, 0)),
        ],
        out_specs=pl.BlockSpec((1, 8, 128), lambda i: (i, 0, 0)),
        compiler_params=pltpu.CompilerParams(
            dimension_semantics=("parallel",)),  # independent partial sums
    )(noise, mat)

    # Tiny finish in plain JAX: one reduce over (grid, 8, 128) partial sums
    # plus a single fused (scale / total) scaling.
    return jnp.sum(partials) * jnp.float32(scale / total)


if __name__ == "__main__":
    # Deterministic "model parameters" (shapes a small conv generator might have).
    key = jax.random.PRNGKey(0)
    k1, k2, k3, k4, k5 = jax.random.split(key, 5)
    params = [
        jax.random.normal(k1, (4, 4, 3, 3), jnp.float32),   # conv weight
        jax.random.normal(k2, (4,), jnp.float32),            # conv bias
        jax.random.normal(k3, (8, 4, 3, 3), jnp.float32),    # conv weight
        jax.random.normal(k4, (8,), jnp.float32),             # conv bias
        jax.random.normal(k5, (64, 64), jnp.float32),          # dense weight
    ]

    # scale follows '2 * SGHMC_alpha * learning_rate'
    scale = 2.0 * 0.01 * 0.1
    total = 64.0  # e.g. dataset size / batch count

    result = noise_loss(params, seed=0, scale=scale, total=total)
    jax.block_until_ready(result)

    assert result.shape == () and result.dtype == jnp.float32
    assert bool(jnp.isfinite(result))
    print("KERNEL_OK")
</pallas_src>

<mosaic_0001>
module attributes {stable_mosaic.version = 11 : i64} {
  func.func @_noise_dot_kernel(%arg0: i32, %arg1: memref<40x128xf32, #tpu.memory_space<vmem>>, %arg2: memref<40x128xf32, #tpu.memory_space<vmem>>, %arg3: memref<1x8x128xf32, #tpu.memory_space<vmem>>) attributes {dimension_semantics = [#tpu.dimension_semantics<parallel>], iteration_bounds = array<i64: 1>, scalar_prefetch = 0 : i64, scratch_operands = 0 : i64, tpu.core_type = #tpu.core_type<tc>, window_params = [{transform_indices = @transform_0, window_bounds = array<i64: 40, 128>}, {transform_indices = @transform_1, window_bounds = array<i64: 40, 128>}, {transform_indices = @transform_2, window_bounds = array<i64: 1, 8, 128>}]} {
    %cst = arith.constant 0.000000e+00 : f32
    %0 = vector.broadcast %cst : f32 to vector<8x128xf32>
    %c0_i32 = arith.constant 0 : i32
    %c8_i32 = arith.constant 8 : i32
    %1 = arith.muli %c0_i32, %c8_i32 : i32
    %2 = arith.index_cast %1 : i32 to index
    %c0 = arith.constant 0 : index
    %3 = vector.load %arg1[%2, %c0] : memref<40x128xf32, #tpu.memory_space<vmem>>, vector<8x128xf32>
    %4 = arith.index_cast %1 : i32 to index
    %c0_0 = arith.constant 0 : index
    %5 = vector.load %arg2[%4, %c0_0] : memref<40x128xf32, #tpu.memory_space<vmem>>, vector<8x128xf32>
    %6 = arith.mulf %3, %5 : vector<8x128xf32>
    %7 = vector.shape_cast %6 : vector<8x128xf32> to vector<1x8x128xf32>
    %cst_1 = arith.constant dense<0.000000e+00> : vector<8x128xf32>
    %8 = vector.multi_reduction <add>, %7, %cst_1 [0] : vector<1x8x128xf32> to vector<8x128xf32>
    %9 = arith.addf %0, %8 : vector<8x128xf32>
    %c1_i32 = arith.constant 1 : i32
    %c8_i32_2 = arith.constant 8 : i32
    %10 = arith.muli %c1_i32, %c8_i32_2 : i32
    %11 = arith.index_cast %10 : i32 to index
    %c0_3 = arith.constant 0 : index
    %12 = vector.load %arg1[%11, %c0_3] : memref<40x128xf32, #tpu.memory_space<vmem>>, vector<8x128xf32>
    %13 = arith.index_cast %10 : i32 to index
    %c0_4 = arith.constant 0 : index
    %14 = vector.load %arg2[%13, %c0_4] : memref<40x128xf32, #tpu.memory_space<vmem>>, vector<8x128xf32>
    %15 = arith.mulf %12, %14 : vector<8x128xf32>
    %16 = vector.shape_cast %15 : vector<8x128xf32> to vector<1x8x128xf32>
    %cst_5 = arith.constant dense<0.000000e+00> : vector<8x128xf32>
    %17 = vector.multi_reduction <add>, %16, %cst_5 [0] : vector<1x8x128xf32> to vector<8x128xf32>
    %18 = arith.addf %9, %17 : vector<8x128xf32>
    %c2_i32 = arith.constant 2 : i32
    %c8_i32_6 = arith.constant 8 : i32
    %19 = arith.muli %c2_i32, %c8_i32_6 : i32
    %20 = arith.index_cast %19 : i32 to index
    %c0_7 = arith.constant 0 : index
    %21 = vector.load %arg1[%20, %c0_7] : memref<40x128xf32, #tpu.memory_space<vmem>>, vector<8x128xf32>
    %22 = arith.index_cast %19 : i32 to index
    %c0_8 = arith.constant 0 : index
    %23 = vector.load %arg2[%22, %c0_8] : memref<40x128xf32, #tpu.memory_space<vmem>>, vector<8x128xf32>
    %24 = arith.mulf %21, %23 : vector<8x128xf32>
    %25 = vector.shape_cast %24 : vector<8x128xf32> to vector<1x8x128xf32>
    %cst_9 = arith.constant dense<0.000000e+00> : vector<8x128xf32>
    %26 = vector.multi_reduction <add>, %25, %cst_9 [0] : vector<1x8x128xf32> to vector<8x128xf32>
    %27 = arith.addf %18, %26 : vector<8x128xf32>
    %c3_i32 = arith.constant 3 : i32
    %c8_i32_10 = arith.constant 8 : i32
    %28 = arith.muli %c3_i32, %c8_i32_10 : i32
    %29 = arith.index_cast %28 : i32 to index
    %c0_11 = arith.constant 0 : index
    %30 = vector.load %arg1[%29, %c0_11] : memref<40x128xf32, #tpu.memory_space<vmem>>, vector<8x128xf32>
    %31 = arith.index_cast %28 : i32 to index
    %c0_12 = arith.constant 0 : index
    %32 = vector.load %arg2[%31, %c0_12] : memref<40x128xf32, #tpu.memory_space<vmem>>, vector<8x128xf32>
    %33 = arith.mulf %30, %32 : vector<8x128xf32>
    %34 = vector.shape_cast %33 : vector<8x128xf32> to vector<1x8x128xf32>
    %cst_13 = arith.constant dense<0.000000e+00> : vector<8x128xf32>
    %35 = vector.multi_reduction <add>, %34, %cst_13 [0] : vector<1x8x128xf32> to vector<8x128xf32>
    %36 = arith.addf %27, %35 : vector<8x128xf32>
    %c4_i32 = arith.constant 4 : i32
    %c8_i32_14 = arith.constant 8 : i32
    %37 = arith.muli %c4_i32, %c8_i32_14 : i32
    %38 = arith.index_cast %37 : i32 to index
    %c0_15 = arith.constant 0 : index
    %39 = vector.load %arg1[%38, %c0_15] : memref<40x128xf32, #tpu.memory_space<vmem>>, vector<8x128xf32>
    %40 = arith.index_cast %37 : i32 to index
    %c0_16 = arith.constant 0 : index
    %41 = vector.load %arg2[%40, %c0_16] : memref<40x128xf32, #tpu.memory_space<vmem>>, vector<8x128xf32>
    %42 = arith.mulf %39, %41 : vector<8x128xf32>
    %43 = vector.shape_cast %42 : vector<8x128xf32> to vector<1x8x128xf32>
    %cst_17 = arith.constant dense<0.000000e+00> : vector<8x128xf32>
    %44 = vector.multi_reduction <add>, %43, %cst_17 [0] : vector<1x8x128xf32> to vector<8x128xf32>
    %45 = arith.addf %36, %44 : vector<8x128xf32>
    %c5_i32 = arith.constant 5 : i32
    %c0_18 = arith.constant 0 : index
    %c0_19 = arith.constant 0 : index
    %c0_20 = arith.constant 0 : index
    %46 = vector.load %arg3[%c0_18, %c0_19, %c0_20] : memref<1x8x128xf32, #tpu.memory_space<vmem>>, vector<1x8x128xf32>
    %47 = vector.shape_cast %46 : vector<1x8x128xf32> to vector<8x128xf32>
    %48 = vector.shape_cast %45 : vector<8x128xf32> to vector<1x8x128xf32>
    tpu.vector_store %arg3[%c0_18, %c0_19, %c0_20], %48 {strides = array<i32>} : memref<1x8x128xf32, #tpu.memory_space<vmem>>, vector<1x8x128xf32>,
    return
  }
  func.func @transform_0(%arg0: i32) -> (i32, i32) {
    %c0_i32 = arith.constant 0 : i32
    %c0_i32_0 = arith.constant 0 : i32
    return %arg0, %c0_i32 : i32, i32
  }
  func.func @transform_1(%arg0: i32) -> (i32, i32) {
    %c0_i32 = arith.constant 0 : i32
    %c0_i32_0 = arith.constant 0 : i32
    return %arg0, %c0_i32 : i32, i32
  }
  func.func @transform_2(%arg0: i32) -> (i32, i32, i32) {
    %c0_i32 = arith.constant 0 : i32
    %c0_i32_0 = arith.constant 0 : i32
    %c0_i32_1 = arith.constant 0 : i32
    return %arg0, %c0_i32, %c0_i32_0 : i32, i32, i32
  }
}

</mosaic_0001>

<bundles_post_ra>
// kernel: tpu_custom_call.1
= control target key start
LH: loop header
LB: loop body
LE: loop exit
PB: predicated region body
PF: predicated region fallthrough
CT: control target
= control target key end

     0   :  { %7 = vsyncpa [#allocation3], 0  ;;  %s215_s0 = inlined_call_operand.hbm [shape: f32[40,128], index: 0, kind: input, shape index: {}]   ;;  %s216_s1 = inlined_call_operand.hbm [shape: f32[40,128], index: 1, kind: input, shape index: {}]   ;;  %s217_s2 = inlined_call_operand.hbm [shape: f32[1,8,128], index: 2, kind: output, shape index: {}]  }
   0x1   :  { %8 = vsyncpa [#allocation6], 0 }
   0x2   :  { %9 = vsyncpa [#allocation4], 0  ;;  %s159_s9 = smov [#allocation2]   ;;  %s87_s13 = scalar_lea.hbm %s215_s0, 640 }
   0x3   :  { %s15_s10 = sshll.u32 %s159_s9, 4  ;;  %p88_p0 = scmp.ne.s32.totalorder %s215_s0, %s87_s13  ;;  %s16_s10 = int_to_ptr.vmem [resolvable:$true] %s15_s10 }
   0x4   :  { %p91_p1 = scmp.lt.u32.totalorder %s87_s13, %s215_s0 }
   0x6   :  { %p93_p2 = pnand %p91_p1, %p88_p0 }
   0x8   :  { %96 = shalt.err (!%p93_p2)
}
   0x9   :  { %s97_s18 = scalar_lea.vmem %s16_s10, 640  ;;  %p102_p4 = scmp.lt.s32.totalorder %s16_s10, %s16_s10 }
   0xa   :  { %p98_p3 = scmp.ne.s32.totalorder %s16_s10, %s97_s18  ;;  %p103_p5 = scmp.lt.s32.totalorder %s97_s18, %s97_s18 }
   0xc   :  { %p104_p6 = por %p103_p5, %p102_p4 }
   0xe   :  { %p105_p7 = pnand %p104_p6, %p98_p3 }
  0x10   :  { %108 = shalt.err (!%p105_p7)
}
  0x11   :  { %s160_s19 = smov 128   ;;  %s161_s20 = smov 8  }
  0x12   :  { %21 = dma.hbm_to_vmem [thread:$0]  %s215_s0, 640, %s16_s10, [#allocation3], %s160_s19, %s160_s19, %s161_s20  }
  0x13   :  { %s162_s23 = smov [#allocation5]   ;;  %s109_s27 = scalar_lea.hbm %s216_s1, 640 }
  0x14   :  { %s27_s24 = sshll.u32 %s162_s23, 4  ;;  %p110_p8 = scmp.ne.s32.totalorder %s216_s1, %s109_s27  ;;  %s28_s24 = int_to_ptr.vmem [resolvable:$true] %s27_s24 }
  0x15   :  { %p113_p9 = scmp.lt.u32.totalorder %s109_s27, %s216_s1 }
  0x17   :  { %p115_p10 = pnand %p113_p9, %p110_p8 }
  0x19   :  { %118 = shalt.err (!%p115_p10)
}
  0x1a   :  { %s119_s4 = scalar_lea.vmem %s28_s24, 640  ;;  %p124_p12 = scmp.lt.s32.totalorder %s28_s24, %s28_s24 }
  0x1b   :  { %p120_p11 = scmp.ne.s32.totalorder %s28_s24, %s119_s4  ;;  %p125_p13 = scmp.lt.s32.totalorder %s119_s4, %s119_s4 }
  0x1d   :  { %p126_p0 = por %p125_p13, %p124_p12 }
  0x1f   :  { %p127_p1 = pnand %p126_p0, %p120_p11 }
  0x21   :  { %130 = shalt.err (!%p127_p1)
}
  0x22   :  { %33 = dma.hbm_to_vmem [thread:$0]  %s216_s1, 640, %s28_s24, [#allocation6], %s160_s19, %s160_s19, %s161_s20  }
  0x23   :  { %153 = dma.done.wait [#allocation3], 640  }
  0x24   :  { %154 = vsyncadd [#allocation3], 4294966656 }
  0x25   :  { %155 = dma.done.wait [#allocation6], 640  }
  0x26   :  { %156 = vsyncadd [#allocation6], 4294966656  ;;  %v40_v0 = vld [vmem:[#allocation2] sm:$0xff]  ;;  %v41_v1 = vld [vmem:[#allocation5] sm:$0xff]  ;;  %s163_s1 = smov [#allocation7]  }
  0x27   :  { %v45_v2 = vld [vmem:[#allocation2 + $0x8] sm:$0xff]  ;;  %v42_v3 = vmul.f32 %v41_v1, %v40_v0  ;;  %v46_v4 = vld [vmem:[#allocation5 + $0x8] sm:$0xff]  ;;  %v51_v6 = vld [vmem:[#allocation5 + $0x10] sm:$0xff]  ;;  %s72_s6 = sshll.u32 %s163_s1, 4  ;;  %s73_s6 = int_to_ptr.vmem [resolvable:$true] %s72_s6 }
  0x28   :  { %v50_v5 = vld [vmem:[#allocation2 + $0x10] sm:$0xff]  ;;  %v47_v7 = vmul.f32 %v46_v4, %v45_v2  ;;  %v55_v9 = vld [vmem:[#allocation2 + $0x18] sm:$0xff]  ;;  %v56_v10 = vld [vmem:[#allocation5 + $0x18] sm:$0xff]  ;;  %s131_s7 = scalar_lea.vmem %s73_s6, 128  ;;  %p136_p3 = scmp.lt.s32.totalorder %s73_s6, %s73_s6 }
  0x29   :  { %v52_v8 = vmul.f32 %v51_v6, %v50_v5  ;;  %v60_v11 = vld [vmem:[#allocation2 + $0x20] sm:$0xff]  ;;  %v61_v12 = vld [vmem:[#allocation5 + $0x20] sm:$0xff]  ;;  %v57_v14 = vmul.f32 %v56_v10, %v55_v9  ;;  %p132_p2 = scmp.ne.s32.totalorder %s73_s6, %s131_s7  ;;  %p137_p4 = scmp.lt.s32.totalorder %s131_s7, %s131_s7 }
  0x2a   :  { %v49_v13 = vadd.f32 %v47_v7, %v42_v3  ;;  %v62_v16 = vmul.f32 %v61_v12, %v60_v11 }
  0x2b   :  { %p138_p5 = por %p137_p4, %p136_p3 }
  0x2c   :  { %v54_v15 = vadd.f32 %v52_v8, %v49_v13 }
  0x2d   :  { %p139_p6 = pnand %p138_p5, %p132_p2 }
  0x2e   :  { %v59_v17 = vadd.f32 %v57_v14, %v54_v15 }
  0x30   :  { %v64_v18 = vadd.f32 %v62_v16, %v59_v17 }
  0x32   :  { %65 = vst [vmem:[#allocation7] sm:$0xff] %v64_v18 }
  0x33   :  { %142 = shalt.err (!%p139_p6)
}
  0x34   :  { %s143_s10 = scalar_lea.hbm %s217_s2, 128 }
  0x35   :  { %p144_p7 = scmp.ne.s32.totalorder %s217_s2, %s143_s10  ;;  %p147_p8 = scmp.lt.u32.totalorder %s143_s10, %s217_s2 }
  0x37   :  { %p149_p9 = pnand %p147_p8, %p144_p7 }
  0x39   :  { %152 = shalt.err (!%p149_p9)
}
  0x3a   :  { %75 = dma.vmem_to_hbm [thread:$0]  %s73_s6, 128, %s217_s2, [#allocation4]  }
  0x3b   :  { %157 = dma.done.wait [#allocation4], 128  }
  0x3c   :  { %158 = vsyncadd [#allocation4], 4294967168 }
  0x3d   :  { %79 = vsyncpa [#allocation3], 1 }
  0x3e   :  { %80 = vsyncpa [#allocation6], 1 }
  0x3f   :  { %81 = vsyncpa [#allocation4], 1 }

</bundles_post_ra>
